<compile_context>
chip_gen: v5e
topology: v5e:2x2
jax: 0.10.0
libtpu: 0.0.40
codegen_flags: <defaults>
</compile_context>

<pallas_src>
import jax
import jax.numpy as jnp
from jax.experimental import pallas as pl
from jax.experimental.pallas import tpu as pltpu

LANE = 128   # vreg lane width
SUB = 8      # vreg sublane width


def _round_up(n, m):
    return (n + m - 1) // m * m


# ----------------------------------------------------------------------------
# Fused kernel: the whole L-layer GIN encoder for one view per grid step.
# ----------------------------------------------------------------------------
def _make_gin_kernel(num_layers, h_pad):
    def kernel(x_ref, adj_ref, pool_ref, w0_ref, wr_ref, b_ref, g_ref, h_ref):
        def gin_layer(h_in_bf16, l):
            # GIN aggregation ((A + I) @ h, eps = 0; +I already folded in adj)
            agg = jnp.dot(adj_ref[...], h_in_bf16,
                          preferred_element_type=jnp.float32)
            w = w0_ref[...] if l == 0 else wr_ref[l - 1]
            h = jnp.dot(agg.astype(jnp.bfloat16), w,
                        preferred_element_type=jnp.float32)
            h = jnp.maximum(h + b_ref[l], 0.0).astype(jnp.bfloat16)
            # per-graph sum pooling, written lane-dense into column block `l`
            g_ref[0, :, l * h_pad:(l + 1) * h_pad] = jnp.dot(
                pool_ref[...], h, preferred_element_type=jnp.float32)
            return h

        h = gin_layer(x_ref[0], 0)
        for l in range(1, num_layers):      # static unroll, L is small
            h_ref[...] = h                  # carry through bf16 VMEM scratch
            h = gin_layer(h_ref[...], l)

    return kernel


def _vmem_budget_bytes(n_pad, f_pad, h_pad, b_pad, n_layer):
    bf16, f32 = 2, 4
    need = (2 * n_pad * f_pad * bf16                     # x view (double buf)
            + n_pad * n_pad * bf16                       # adj (single buf)
            + b_pad * n_pad * bf16                       # pool (single buf)
            + f_pad * h_pad * bf16                       # W0
            + max(n_layer - 1, 1) * h_pad * h_pad * bf16 # W1..L-1
            + n_layer * h_pad * f32                      # biases
            + n_pad * h_pad * bf16                       # h scratch (bf16)
            + 2 * n_pad * h_pad * f32                    # f32 temporaries
            + 2 * b_pad * n_layer * h_pad * f32)         # out slab (double buf)
    # generous headroom; cap at v7x's 64 MiB physical VMEM
    return int(min(max(4 * need, 16 * 2 ** 20), 64 * 2 ** 20))


def _run_fused_encoder(x_views, adj_pad, pool_pad, w0, w_rest, b_stack):
    """x_views [V,N_pad,F_pad] bf16, adj_pad [N_pad,N_pad] bf16,
    pool_pad [B_pad,N_pad] bf16, w0 [F_pad,H_pad] bf16,
    w_rest [max(L-1,1),H_pad,H_pad] bf16, b_stack [L,1,H_pad] f32
    ->  g_all [V, B_pad, L*H_pad] f32 (lane-dense per-layer column blocks)."""
    V, N_pad, F_pad = x_views.shape
    B_pad = pool_pad.shape[0]
    L = b_stack.shape[0]
    H_pad = w0.shape[1]

    single = pl.Buffered(1)   # grid-invariant blocks: no double buffering

    return pl.pallas_call(
        _make_gin_kernel(L, H_pad),
        out_shape=jax.ShapeDtypeStruct((V, B_pad, L * H_pad), jnp.float32),
        grid=(V,),
        in_specs=[
            pl.BlockSpec((1, N_pad, F_pad), lambda v: (v, 0, 0)),        # x view
            pl.BlockSpec((N_pad, N_pad), lambda v: (0, 0),
                         pipeline_mode=single),                          # adj+I
            pl.BlockSpec((B_pad, N_pad), lambda v: (0, 0),
                         pipeline_mode=single),                          # pooling
            pl.BlockSpec((F_pad, H_pad), lambda v: (0, 0),
                         pipeline_mode=single),                          # W_0
            pl.BlockSpec(w_rest.shape, lambda v: (0, 0, 0),
                         pipeline_mode=single),                          # W_1..L-1
            pl.BlockSpec((L, 1, H_pad), lambda v: (0, 0, 0),
                         pipeline_mode=single),                          # biases
        ],
        out_specs=pl.BlockSpec((1, B_pad, L * H_pad), lambda v: (v, 0, 0)),
        scratch_shapes=[pltpu.VMEM((N_pad, H_pad), jnp.bfloat16)],
        compiler_params=pltpu.CompilerParams(
            dimension_semantics=("parallel",),
            vmem_limit_bytes=_vmem_budget_bytes(N_pad, F_pad, H_pad, B_pad, L)),
    )(x_views, adj_pad, pool_pad, w0, w_rest, b_stack)


# ----------------------------------------------------------------------------
# Glue: dense adjacency / pooling matrices (plain JAX scatter, not hot path)
# ----------------------------------------------------------------------------
def build_adj(edge_index, edge_weight, num_nodes):
    src, dst = edge_index[0], edge_index[1]
    w = (jnp.ones(src.shape[0], jnp.float32)
         if edge_weight is None else edge_weight.astype(jnp.float32))
    adj = jnp.zeros((num_nodes, num_nodes), jnp.float32).at[dst, src].add(w)
    return adj + jnp.eye(num_nodes, dtype=jnp.float32)   # GIN (1+eps)*self, eps=0


def build_pool(batch, num_graphs):
    return jax.nn.one_hot(batch, num_graphs, dtype=jnp.float32).T   # [B, N]


# ----------------------------------------------------------------------------
# Multi-view GIN encoder: pads operands once, runs the single fused kernel,
# returns per-view pooled embeddings [num_graphs, n_hidden * n_layer].
# ----------------------------------------------------------------------------
def gin_encoder_views(x_views_list, adj, pool_mat, enc_params):
    # TODO(synk): kernel assumes each GIN layer is a single Linear+ReLU; if the
    # injected torch encoder uses a 2-layer MLP / BatchNorm per GINConv, extend
    # the per-layer body accordingly.
    N, F = x_views_list[0].shape
    B = pool_mat.shape[0]
    H = enc_params[0]["w"].shape[1]
    L = len(enc_params)
    V = len(x_views_list)

    F_pad = _round_up(F, LANE)
    H_pad = _round_up(H, LANE)
    N_pad = _round_up(N, LANE)      # lane axis of adj / pool
    B_pad = _round_up(B, SUB)

    # operands built with pad/stack (single fused copies), cast to bf16 at the
    # kernel boundary (adjacency weights are small integers -> exact in bf16)
    x_views = jnp.stack([
        jnp.pad(xv.astype(jnp.float32), ((0, N_pad - N), (0, F_pad - F)))
        for xv in x_views_list]).astype(jnp.bfloat16)
    adj_pad = jnp.pad(adj, ((0, N_pad - N), (0, N_pad - N))).astype(jnp.bfloat16)
    pool_pad = jnp.pad(pool_mat,
                       ((0, B_pad - B), (0, N_pad - N))).astype(jnp.bfloat16)

    w0 = jnp.pad(enc_params[0]["w"].astype(jnp.float32),
                 ((0, F_pad - F), (0, H_pad - H))).astype(jnp.bfloat16)
    if L > 1:
        w_rest = jnp.stack([
            jnp.pad(enc_params[l]["w"].astype(jnp.float32),
                    ((0, H_pad - H), (0, H_pad - H)))
            for l in range(1, L)]).astype(jnp.bfloat16)
    else:
        w_rest = jnp.zeros((1, H_pad, H_pad), jnp.bfloat16)    # unused placeholder
    b_stack = jnp.stack([
        jnp.pad(enc_params[l]["b"].astype(jnp.float32), (0, H_pad - H))[None, :]
        for l in range(L)])                                    # [L, 1, H_pad] f32

    g_all = _run_fused_encoder(x_views, adj_pad, pool_pad, w0, w_rest, b_stack)

    # single reshape epilogue: [V, B_pad, L*H_pad] -> [V, B, L*H]
    g = g_all[:, :B, :].reshape(V, B, L, H_pad)[..., :H].reshape(V, B, L * H)
    return [g[v] for v in range(V)]


# ----------------------------------------------------------------------------
# Encoder.forward
# ----------------------------------------------------------------------------
def encoder_forward(params, x, edge_index, edge_attr, batch, num_graphs,
                    perturb=None, is_ft=False):
    N = x.shape[0]
    adj = build_adj(edge_index, edge_attr, N)     # shared by all views
    pool = build_pool(batch, num_graphs)
    enc = params["encoder"]

    x_anchor = x if perturb is None else x + perturb

    if is_ft:
        (g,) = gin_encoder_views([x_anchor], adj, pool, enc)
        return g

    # TODO(synk): torch.randperm-based random augmentor selection has no Pallas
    # equivalent (host RNG over external augmentor modules); deterministic
    # augmentations are used: aug1 = identity, aug2 = fixed feature masking,
    # idx1 = 0, idx2 = 1 ("not two_aug" branch: idx2 + 1).
    idx1 = 0
    idx2 = 1
    feat_mask = (jnp.arange(x.shape[1]) % 2 == 0).astype(x.dtype)
    x2 = x * feat_mask[None, :]

    # adj1/adj2 identical to adj (feature-only augs) -> built once above.
    if perturb is None:
        # aug1 view is bit-identical to the anchor -> g1 == g, skip a pass.
        g, g2 = gin_encoder_views([x_anchor, x2], adj, pool, enc)
        g1 = g
    else:
        g, g1, g2 = gin_encoder_views([x_anchor, x, x2], adj, pool, enc)

    anchor_aug_label = jnp.full((g.shape[0],), idx1, jnp.int32)
    pos_aug_label = jnp.full((g.shape[0],), idx2, jnp.int32)
    aug_label = jnp.concatenate([anchor_aug_label, pos_aug_label], axis=0)
    return g, g1, g2, aug_label


# ----------------------------------------------------------------------------
# Deterministic parameter init (mirrors Encoder.__init__ / init_emb)
# ----------------------------------------------------------------------------
def xavier_uniform(key, shape):
    fan_in, fan_out = shape
    bound = (6.0 / (fan_in + fan_out)) ** 0.5
    return jax.random.uniform(key, shape, jnp.float32, -bound, bound)


def init_mlp_head(key, in_dim, out_dim):
    # Linear + BatchNorm1d + ReLU + Linear — built in __init__, only exercised
    # by cal_loss (never by forward()); initialized here for completeness.
    k1, k2 = jax.random.split(key)
    return dict(
        w1=xavier_uniform(k1, (in_dim, out_dim)), b1=jnp.zeros((out_dim,)),
        bn_gamma=jnp.ones((out_dim,)), bn_beta=jnp.zeros((out_dim,)),
        bn_mean=jnp.zeros((out_dim,)), bn_var=jnp.ones((out_dim,)),
        w2=xavier_uniform(k2, (out_dim, out_dim)), b2=jnp.zeros((out_dim,)),
    )


def init_params(key, in_feat, n_hidden, n_layer):
    project_dim = n_hidden * n_layer
    keys = jax.random.split(key, n_layer + 3)
    enc = []
    d = in_feat
    for l in range(n_layer):
        enc.append(dict(w=xavier_uniform(keys[l], (d, n_hidden)),
                        b=jnp.zeros((n_hidden,))))
        d = n_hidden
    return dict(
        encoder=enc,
        essen_layer=init_mlp_head(keys[n_layer + 0], project_dim, project_dim),
        aug_layer=init_mlp_head(keys[n_layer + 1], project_dim, project_dim),
        resc_layer=init_mlp_head(keys[n_layer + 2], project_dim, project_dim),
    )


# ----------------------------------------------------------------------------
# Pure-JAX f32 reference for numerical verification
# ----------------------------------------------------------------------------
def reference_encoder(x, adj, pool_mat, enc_params):
    h = x.astype(jnp.float32)
    gs = []
    for layer in enc_params:
        h = jnp.maximum(adj @ h @ layer["w"] + layer["b"], 0.0)
        gs.append(pool_mat @ h)
    return jnp.concatenate(gs, axis=1)


# ----------------------------------------------------------------------------
if __name__ == "__main__":
    key = jax.random.PRNGKey(0)
    N, F, H, L, B = 16, 8, 16, 2, 4        # nodes, feat, n_hidden, n_layer, graphs

    k_param, k_x = jax.random.split(key)
    params = init_params(k_param, F, H, L)

    x = jax.random.normal(k_x, (N, F), jnp.float32)

    # 4 graphs of 4 nodes each; bidirectional path edges within each graph
    nodes_per_graph = N // B
    src, dst = [], []
    for i in range(N - 1):
        if i % nodes_per_graph != nodes_per_graph - 1:
            src += [i, i + 1]
            dst += [i + 1, i]
    edge_index = jnp.array([src, dst], dtype=jnp.int32)      # [2, 24]
    edge_attr = jnp.ones((edge_index.shape[1],), jnp.float32)
    batch = jnp.repeat(jnp.arange(B, dtype=jnp.int32), nodes_per_graph)

    g, g1, g2, aug_label = encoder_forward(
        params, x, edge_index, edge_attr, batch, num_graphs=B, is_ft=False)
    g_ft = encoder_forward(
        params, x, edge_index, edge_attr, batch, num_graphs=B, is_ft=True)
    jax.block_until_ready((g, g1, g2, aug_label, g_ft))

    assert g.shape == (B, H * L) and g1.shape == (B, H * L) and g2.shape == (B, H * L)
    assert aug_label.shape == (2 * B,)
    assert g_ft.shape == (B, H * L)

    # numerical check vs f32 reference (kernel runs in bf16 -> loose tolerance)
    adj_ref = build_adj(edge_index, edge_attr, N)
    pool_ref = build_pool(batch, B)
    feat_mask = (jnp.arange(F) % 2 == 0).astype(x.dtype)
    for out, x_in in ((g, x), (g2, x * feat_mask[None, :])):
        ref = reference_encoder(x_in, adj_ref, pool_ref, params["encoder"])
        rel_err = jnp.max(jnp.abs(out - ref)) / (jnp.max(jnp.abs(ref)) + 1e-6)
        assert float(rel_err) < 0.06, f"rel_err={float(rel_err)}"

    print("KERNEL_OK")
</pallas_src>

<mosaic_0001>
module attributes {stable_mosaic.version = 11 : i64} {
  func.func @kernel(%arg0: i32, %arg1: memref<1x128x128xbf16, #tpu.memory_space<vmem>>, %arg2: memref<128x128xbf16, #tpu.memory_space<vmem>>, %arg3: memref<8x128xbf16, #tpu.memory_space<vmem>>, %arg4: memref<128x128xbf16, #tpu.memory_space<vmem>>, %arg5: memref<1x128x128xbf16, #tpu.memory_space<vmem>>, %arg6: memref<2x1x128xf32, #tpu.memory_space<vmem>>, %arg7: memref<1x8x256xf32, #tpu.memory_space<vmem>>, %arg8: memref<128x128xbf16, #tpu.memory_space<vmem>>) attributes {dimension_semantics = [#tpu.dimension_semantics<parallel>], iteration_bounds = array<i64: 2>, scalar_prefetch = 0 : i64, scratch_operands = 1 : i64, tpu.core_type = #tpu.core_type<tc>, window_params = [{transform_indices = @transform_0, window_bounds = array<i64: 1, 128, 128>}, {pipeline_mode = #tpu.pipeline_mode<synchronous>, transform_indices = @transform_1, window_bounds = array<i64: 128, 128>}, {pipeline_mode = #tpu.pipeline_mode<synchronous>, transform_indices = @transform_2, window_bounds = array<i64: 8, 128>}, {pipeline_mode = #tpu.pipeline_mode<synchronous>, transform_indices = @transform_3, window_bounds = array<i64: 128, 128>}, {pipeline_mode = #tpu.pipeline_mode<synchronous>, transform_indices = @transform_4, window_bounds = array<i64: 1, 128, 128>}, {pipeline_mode = #tpu.pipeline_mode<synchronous>, transform_indices = @transform_5, window_bounds = array<i64: 2, 1, 128>}, {transform_indices = @transform_6, window_bounds = array<i64: 1, 8, 256>}]} {
    %c0 = arith.constant 0 : index
    %c0_0 = arith.constant 0 : index
    %c0_1 = arith.constant 0 : index
    %0 = vector.load %arg1[%c0, %c0_0, %c0_1] : memref<1x128x128xbf16, #tpu.memory_space<vmem>>, vector<1x128x128xbf16>
    %1 = vector.shape_cast %0 : vector<1x128x128xbf16> to vector<128x128xbf16>
    %c0_2 = arith.constant 0 : index
    %c0_3 = arith.constant 0 : index
    %2 = vector.load %arg2[%c0_2, %c0_3] : memref<128x128xbf16, #tpu.memory_space<vmem>>, vector<128x128xbf16>
    %cst = arith.constant dense<0.000000e+00> : vector<128x128xf32>
    %3 = tpu.matmul %2, %1, %cst {dimension_numbers = #tpu.dot_dimension_numbers<[1], [0], [0], [1], [0, 0, 1, 1], [], []>} : vector<128x128xbf16>, vector<128x128xbf16>, vector<128x128xf32> -> vector<128x128xf32>
    %c0_4 = arith.constant 0 : index
    %c0_5 = arith.constant 0 : index
    %4 = vector.load %arg4[%c0_4, %c0_5] : memref<128x128xbf16, #tpu.memory_space<vmem>>, vector<128x128xbf16>
    %5 = arith.truncf %3 : vector<128x128xf32> to vector<128x128xbf16>
    %cst_6 = arith.constant dense<0.000000e+00> : vector<128x128xf32>
    %6 = tpu.matmul %5, %4, %cst_6 {dimension_numbers = #tpu.dot_dimension_numbers<[1], [0], [0], [1], [0, 0, 1, 1], [], []>} : vector<128x128xbf16>, vector<128x128xbf16>, vector<128x128xf32> -> vector<128x128xf32>
    %c0_7 = arith.constant 0 : index
    %c0_8 = arith.constant 0 : index
    %c0_9 = arith.constant 0 : index
    %7 = vector.load %arg6[%c0_7, %c0_8, %c0_9] : memref<2x1x128xf32, #tpu.memory_space<vmem>>, vector<1x1x128xf32>
    %8 = vector.shape_cast %7 : vector<1x1x128xf32> to vector<1x128xf32>
    %9 = vector.broadcast %8 : vector<1x128xf32> to vector<128x128xf32>
    %10 = arith.addf %6, %9 : vector<128x128xf32>
    %cst_10 = arith.constant 0.000000e+00 : f32
    %11 = vector.broadcast %cst_10 : f32 to vector<128x128xf32>
    %12 = arith.maximumf %10, %11 : vector<128x128xf32>
    %13 = arith.truncf %12 : vector<128x128xf32> to vector<128x128xbf16>
    %c0_11 = arith.constant 0 : index
    %c0_12 = arith.constant 0 : index
    %14 = vector.load %arg3[%c0_11, %c0_12] : memref<8x128xbf16, #tpu.memory_space<vmem>>, vector<8x128xbf16>
    %cst_13 = arith.constant dense<0.000000e+00> : vector<8x128xf32>
    %15 = tpu.matmul %14, %13, %cst_13 {dimension_numbers = #tpu.dot_dimension_numbers<[1], [0], [0], [1], [0, 0, 1, 1], [], []>} : vector<8x128xbf16>, vector<128x128xbf16>, vector<8x128xf32> -> vector<8x128xf32>
    %c0_14 = arith.constant 0 : index
    %c0_15 = arith.constant 0 : index
    %c0_16 = arith.constant 0 : index
    %16 = vector.load %arg7[%c0_14, %c0_15, %c0_16] : memref<1x8x256xf32, #tpu.memory_space<vmem>>, vector<1x8x128xf32>
    %17 = vector.shape_cast %16 : vector<1x8x128xf32> to vector<8x128xf32>
    %18 = vector.shape_cast %15 : vector<8x128xf32> to vector<1x8x128xf32>
    tpu.vector_store %arg7[%c0_14, %c0_15, %c0_16], %18 {strides = array<i32>} : memref<1x8x256xf32, #tpu.memory_space<vmem>>, vector<1x8x128xf32>,
    %c0_17 = arith.constant 0 : index
    %c0_18 = arith.constant 0 : index
    %19 = vector.load %arg8[%c0_17, %c0_18] : memref<128x128xbf16, #tpu.memory_space<vmem>>, vector<128x128xbf16>
    tpu.vector_store %arg8[%c0_17, %c0_18], %13 {strides = array<i32>} : memref<128x128xbf16, #tpu.memory_space<vmem>>, vector<128x128xbf16>,
    %c0_19 = arith.constant 0 : index
    %c0_20 = arith.constant 0 : index
    %20 = vector.load %arg8[%c0_19, %c0_20] : memref<128x128xbf16, #tpu.memory_space<vmem>>, vector<128x128xbf16>
    %c0_21 = arith.constant 0 : index
    %c0_22 = arith.constant 0 : index
    %21 = vector.load %arg2[%c0_21, %c0_22] : memref<128x128xbf16, #tpu.memory_space<vmem>>, vector<128x128xbf16>
    %cst_23 = arith.constant dense<0.000000e+00> : vector<128x128xf32>
    %22 = tpu.matmul %21, %20, %cst_23 {dimension_numbers = #tpu.dot_dimension_numbers<[1], [0], [0], [1], [0, 0, 1, 1], [], []>} : vector<128x128xbf16>, vector<128x128xbf16>, vector<128x128xf32> -> vector<128x128xf32>
    %c0_24 = arith.constant 0 : index
    %c0_25 = arith.constant 0 : index
    %c0_26 = arith.constant 0 : index
    %23 = vector.load %arg5[%c0_24, %c0_25, %c0_26] : memref<1x128x128xbf16, #tpu.memory_space<vmem>>, vector<1x128x128xbf16>
    %24 = vector.shape_cast %23 : vector<1x128x128xbf16> to vector<128x128xbf16>
    %25 = arith.truncf %22 : vector<128x128xf32> to vector<128x128xbf16>
    %cst_27 = arith.constant dense<0.000000e+00> : vector<128x128xf32>
    %26 = tpu.matmul %25, %24, %cst_27 {dimension_numbers = #tpu.dot_dimension_numbers<[1], [0], [0], [1], [0, 0, 1, 1], [], []>} : vector<128x128xbf16>, vector<128x128xbf16>, vector<128x128xf32> -> vector<128x128xf32>
    %c1 = arith.constant 1 : index
    %c0_28 = arith.constant 0 : index
    %c0_29 = arith.constant 0 : index
    %27 = vector.load %arg6[%c1, %c0_28, %c0_29] : memref<2x1x128xf32, #tpu.memory_space<vmem>>, vector<1x1x128xf32>
    %28 = vector.shape_cast %27 : vector<1x1x128xf32> to vector<1x128xf32>
    %29 = vector.broadcast %28 : vector<1x128xf32> to vector<128x128xf32>
    %30 = arith.addf %26, %29 : vector<128x128xf32>
    %cst_30 = arith.constant 0.000000e+00 : f32
    %31 = vector.broadcast %cst_30 : f32 to vector<128x128xf32>
    %32 = arith.maximumf %30, %31 : vector<128x128xf32>
    %33 = arith.truncf %32 : vector<128x128xf32> to vector<128x128xbf16>
    %c0_31 = arith.constant 0 : index
    %c0_32 = arith.constant 0 : index
    %34 = vector.load %arg3[%c0_31, %c0_32] : memref<8x128xbf16, #tpu.memory_space<vmem>>, vector<8x128xbf16>
    %cst_33 = arith.constant dense<0.000000e+00> : vector<8x128xf32>
    %35 = tpu.matmul %34, %33, %cst_33 {dimension_numbers = #tpu.dot_dimension_numbers<[1], [0], [0], [1], [0, 0, 1, 1], [], []>} : vector<8x128xbf16>, vector<128x128xbf16>, vector<8x128xf32> -> vector<8x128xf32>
    %c0_34 = arith.constant 0 : index
    %c0_35 = arith.constant 0 : index
    %c128 = arith.constant 128 : index
    %36 = vector.load %arg7[%c0_34, %c0_35, %c128] : memref<1x8x256xf32, #tpu.memory_space<vmem>>, vector<1x8x128xf32>
    %37 = vector.shape_cast %36 : vector<1x8x128xf32> to vector<8x128xf32>
    %38 = vector.shape_cast %35 : vector<8x128xf32> to vector<1x8x128xf32>
    tpu.vector_store %arg7[%c0_34, %c0_35, %c128], %38 {strides = array<i32>} : memref<1x8x256xf32, #tpu.memory_space<vmem>>, vector<1x8x128xf32>,
    return
  }
  func.func @transform_0(%arg0: i32) -> (i32, i32, i32) {
    %c0_i32 = arith.constant 0 : i32
    %c0_i32_0 = arith.constant 0 : i32
    %c0_i32_1 = arith.constant 0 : i32
    return %arg0, %c0_i32, %c0_i32_0 : i32, i32, i32
  }
  func.func @transform_1(%arg0: i32) -> (i32, i32) {
    %c0_i32 = arith.constant 0 : i32
    %c0_i32_0 = arith.constant 0 : i32
    %c0_i32_1 = arith.constant 0 : i32
    return %c0_i32, %c0_i32_0 : i32, i32
  }
  func.func @transform_2(%arg0: i32) -> (i32, i32) {
    %c0_i32 = arith.constant 0 : i32
    %c0_i32_0 = arith.constant 0 : i32
    %c0_i32_1 = arith.constant 0 : i32
    return %c0_i32, %c0_i32_0 : i32, i32
  }
  func.func @transform_3(%arg0: i32) -> (i32, i32) {
    %c0_i32 = arith.constant 0 : i32
    %c0_i32_0 = arith.constant 0 : i32
    %c0_i32_1 = arith.constant 0 : i32
    return %c0_i32, %c0_i32_0 : i32, i32
  }
  func.func @transform_4(%arg0: i32) -> (i32, i32, i32) {
    %c0_i32 = arith.constant 0 : i32
    %c0_i32_0 = arith.constant 0 : i32
    %c0_i32_1 = arith.constant 0 : i32
    %c0_i32_2 = arith.constant 0 : i32
    return %c0_i32, %c0_i32_0, %c0_i32_1 : i32, i32, i32
  }
  func.func @transform_5(%arg0: i32) -> (i32, i32, i32) {
    %c0_i32 = arith.constant 0 : i32
    %c0_i32_0 = arith.constant 0 : i32
    %c0_i32_1 = arith.constant 0 : i32
    %c0_i32_2 = arith.constant 0 : i32
    return %c0_i32, %c0_i32_0, %c0_i32_1 : i32, i32, i32
  }
  func.func @transform_6(%arg0: i32) -> (i32, i32, i32) {
    %c0_i32 = arith.constant 0 : i32
    %c0_i32_0 = arith.constant 0 : i32
    %c0_i32_1 = arith.constant 0 : i32
    return %arg0, %c0_i32, %c0_i32_0 : i32, i32, i32
  }
}

</mosaic_0001>

<bundles_post_ra>
// kernel: tpu_custom_call.1
= control target key start
LH: loop header
LB: loop body
LE: loop exit
PB: predicated region body
PF: predicated region fallthrough
CT: control target
= control target key end

     0   :  { %11 = vsyncpa [#allocation4], 0  ;;  %s2119_s0 = inlined_call_operand.hbm [shape: bf16[2,128,128], index: 0, kind: input, shape index: {}]   ;;  %s2120_s1 = inlined_call_operand.hbm [shape: bf16[128,128], index: 1, kind: input, shape index: {}]   ;;  %s2121_s2 = inlined_call_operand.hbm [shape: bf16[8,128], index: 2, kind: input, shape index: {}]   ;;  %s2122_s3 = inlined_call_operand.hbm [shape: bf16[128,128], index: 3, kind: input, shape index: {}]   ;;  %s2123_s4 = inlined_call_operand.hbm [shape: bf16[1,128,128], index: 4, kind: input, shape index: {}]   ;;  %s2124_s5 = inlined_call_operand.vmem [shape: f32[2,1,128], index: 5, kind: input, shape index: {}]   ;;  %s2125_s6 = inlined_call_operand.hbm [shape: f32[2,8,256], index: 6, kind: output, shape index: {}]  }
   0x1   :  { %13 = vsyncpa [#allocation4 + $0x1], 0 }
   0x2   :  { %14 = vsyncpa [#allocation7], 0 }
   0x3   :  { %15 = vsyncpa [#allocation10], 0 }
   0x4   :  { %16 = vsyncpa [#allocation5], 0 }
   0x5   :  { %18 = vsyncpa [#allocation5 + $0x1], 0  ;;  %s1886_s21 = smov 0   ;;  %s1888_s22 = smov 0  }
   0x6   :  { %s1890_s23 = smov 0   ;;  %s1892_s24 = smov 0  }
   0x7 LB: > { %s1907_s25 = sadd.s32 4294967295, %s1843_s24   ;;  %s1216_s26 = sadd.s32 4294967294, %s1843_s24   ;;  %s1843_s24 = sphi %s1892_s24, %s2140_s24   ;;  %s1839_s23 = sphi %s1890_s23, %s2139_s23   ;;  %s1835_s22 = sphi %s1888_s22, %s2138_s22   ;;  %s1831_s21 = sphi %s1886_s21, %s2137_s21  }
   0x8   : > { %p44_p0 = scmp.ne.s32.totalorder %s1835_s22, %s1831_s21  ;;  %p45_p1 = scmp.eq.s32.totalorder %s1907_s25, 0 }
   0x9   : > { %p173_p2 = scmp.eq.s32.totalorder %s1907_s25, 1  ;;  %p179_p3 = scmp.eq.s32.totalorder %s1216_s26, 1 }
   0xa   : > { %p1916_p4 = por %p45_p1, %p44_p0  ;;  %p1217_p5 = scmp.ge.s32.totalorder %s1843_s24, 1 }
   0xb   : > { %p1921_p6 = por %p179_p3, %p44_p0  ;;  %p186_p7 = scmp.lt.s32.totalorder %s1843_s24, 3 }
   0xc   : > { %s197_s7 = sshll.u32 %s2120_s1, 4  ;;  %s1845_s9 = smov [#allocation6]   ;;  %s198_s7 = int_to_ptr.hbm [resolvable:$true] %s197_s7 }
   0xd   : > { %p1929_p8 = pnand %p1217_p5, %p186_p7  ;;  %s199_s10 = sshll.u32 %s1845_s9, 4  ;;  %s200_s10 = int_to_ptr.vmem [resolvable:$true] %s199_s10 }
   0xe   : > { %s223_s14 = sshll.u32 %s2122_s3, 4  ;;  %s2126_s15 = smov 64   ;;  %s224_s14 = int_to_ptr.hbm [resolvable:$true] %s223_s14 }
   0xf   : > { %p1548_p9 = pneg %p1929_p8  ;;  %s2127_s16 = smov 4  }
  0x10   : > { %s1848_s17 = smov [#allocation9]   ;;  %s212_s26 = sshll.u32 %s2121_s2, 4  ;;  %s213_s26 = int_to_ptr.hbm [resolvable:$true] %s212_s26 }
  0x11   : > { %p1937_p10 = pnand %p1548_p9, %p45_p1  ;;  %s225_s18 = sshll.u32 %s1848_s17, 4  ;;  %s226_s18 = int_to_ptr.vmem [resolvable:$true] %s225_s18 }
  0x12   : > { %s1849_s9 = smov [#allocation8]   ;;  %s1850_s12 = smov [#allocation11]  }
  0x13   : > { %1551 = dma.hbm_to_vmem [thread:$0]  (!%p1937_p10), %s198_s7, 1024, %s200_s10, [#allocation7], %s2126_s15, %s2126_s15, %s2127_s16  }
  0x14   : > { %1557 = dma.hbm_to_vmem [thread:$0]  (!%p1937_p10), %s224_s14, 1024, %s226_s18, [#allocation10], %s2126_s15, %s2126_s15, %s2127_s16  }
  0x15   : > { %s237_s7 = sshll.u32 %s2123_s4, 4  ;;  %s214_s10 = sshll.u32 %s1849_s9, 4  ;;  %s238_s7 = int_to_ptr.hbm [resolvable:$true] %s237_s7  ;;  %s215_s10 = int_to_ptr.vmem [resolvable:$true] %s214_s10 }
  0x16   : > { %1554 = dma.hbm_to_vmem [thread:$0]  (!%p1937_p10), %s213_s26, 64, %s215_s10, [#allocation7]  }
  0x17   : > { %s239_s13 = sshll.u32 %s1850_s12, 4  ;;  %s1969_s14 = sadd.s32 1, %s1843_s24   ;;  %s240_s13 = int_to_ptr.vmem [resolvable:$true] %s239_s13 }
  0x18   : > { %1560 = dma.hbm_to_vmem [thread:$0]  (!%p1937_p10), %s238_s7, 1024, %s240_s13, [#allocation10], %s2126_s15, %s2126_s15, %s2127_s16  }
  0x19   : > { %s31_s17 = sadd.s32 1, %s1839_s23  ;;  %s28_s18 = ssub.s32 %s1843_s24, %s1969_s14 }
  0x1a   : > { %p38_p12 = scmp.ne.s32.totalorder %s1839_s23, %s1835_s22  ;;  %p29_p13 = scmp.eq.s32.totalorder %s28_s18, 0 }
  0x1b   : > { %p39_p0 = scmp.eq.s32.totalorder %s1843_s24, 0  ;;  %p1573_p5 = scmp.lt.s32.totalorder %s1843_s24, 2 }
  0x1c   : > { %p1979_p3 = por %p173_p2, %p38_p12  ;;  %s256_s11 = sand.u32 1, %s1839_s23  }
  0x1d   : > { %s1985_s20 = scalar_select %p29_p13, %s1839_s23, %s31_s17  }
  0x1e   : > { %p40_p7 = por %p39_p0, %p38_p12  ;;  %s1223_s26 = sshll.u32 %s256_s11, 6 }
  0x1f   : > { %s1431_s29 = sshll.u32 %s1843_s24, 6  ;;  %s260_s10 = scalar_lea.vmem [#allocation3], %s1223_s26 }
  0x20   : > { %s265_s9 = scalar_lea.hbm %s2119_s0, %s1431_s29  ;;  %s268_s12 = sshll.u32 %s260_s10, 4  ;;  %s269_s12 = int_to_ptr.vmem [resolvable:$true] %s268_s12 }
  0x21   : > { %s266_s13 = sshll.u32 %s265_s9, 4  ;;  %p1992_p2 = pnand %p1573_p5, %p40_p7  ;;  %s267_s13 = int_to_ptr.hbm [resolvable:$true] %s266_s13 }
  0x22   : > { %s257_s17 = scalar_lea.sflag [#allocation4], %s256_s11  ;;  %s1739_s15 = sshra.s32 %s267_s13, 4  ;;  %s1740_s15 = int_to_ptr.hbm [resolvable:$true] %s1739_s15 }
  0x23   : > { %s1741_s16 = scalar_lea.hbm %s1740_s15, 64  ;;  %p1743_p10 = pneg %p1992_p2 }
  0x24   : > { %p1742_p9 = scmp.ne.s32.totalorder %s1740_s15, %s1741_s16  ;;  %s1746_s30 = scalar_lea.hbm %s2119_s0, 128 }
  0x25   : > { %p1747_p0 = scmp.lt.s32.totalorder %s1740_s15, %s2119_s0  ;;  %p1748_p5 = scmp.lt.s32.totalorder %s1746_s30, %s1741_s16 }
  0x26   : > { %p1744_p12 = pnand %p1743_p10, %p1742_p9 }
  0x27   : > { %p1749_p7 = por %p1748_p5, %p1747_p0 }
  0x28   : > { %p1745_p13 = pneg %p1744_p12 }
  0x2a   : > { %p1750_p11 = pnand %p1749_p7, %p1745_p13 }
  0x2c   : > { %1753 = shalt.err (!%p1750_p11)
}
  0x2d   : > { %s2134_s11 = smov 4   ;;  %s2135_s10 = smov 64  }
  0x2e   : > { %1564 = dma.hbm_to_vmem [thread:$0]  (!%p1992_p2), %s267_s13, 1024, %s269_s12, %s257_s17, %s2135_s10, %s2135_s10, %s2134_s11  }
  0x2f   : > { %280 = sbr.rel (%p1929_p8) target bundleno = 1081 (0x439), region = 44  ;;  %s2012_s29 = sand.u32 (!%p1929_p8), 1, %s1835_s22  }
  0x30   : > { %s1227_s15 = sshll.u32 (!%p1929_p8), %s2012_s29, 6  ;;  %s283_s16 = scalar_lea.sflag (!%p1929_p8), [#allocation4], %s2012_s29 }
  0x31   : > { %s286_s26 = scalar_lea.vmem (!%p1929_p8), [#allocation3], %s1227_s15 }
  0x34   : > { %1814 = dma.done.wait (%p1916_p4), %s283_s16, 1024  }
  0x35   : > { %1816 = vsyncadd (%p1916_p4), %s283_s16, 4294966272 }
  0x36   : > { %1818 = dma.done.wait (%p45_p1), [#allocation7], 1088  }
  0x37   : > { %1820 = vsyncadd (%p45_p1), [#allocation7], 4294966208 }
  0x38   : > { %1822 = dma.done.wait (%p45_p1), [#allocation10], 2048  }
  0x39   : > { %1824 = vsyncadd (%p45_p1), [#allocation10], 4294965248  ;;  %v1439_v0 = vld [vmem:[%s286_s26 + $0x38] sm:$0xff]  ;;  %v1438_v1 = vld [vmem:[%s286_s26 + $0x30] sm:$0xff]  ;;  %s1232_s18 = sshll.u32 %s2012_s29, 4  ;;  %s1480_s30 = sshll.u32 %s1907_s25, 4 }
  0x3a   : > { %464 = vmatpush.bf16.msra.mxu0 %v1439_v0  ;;  %v1437_v2 = vld [vmem:[%s286_s26 + $0x28] sm:$0xff]  ;;  %v1436_v3 = vld [vmem:[%s286_s26 + $0x20] sm:$0xff]  ;;  %v1435_v4 = vld [vmem:[%s286_s26 + $0x18] sm:$0xff]  ;;  %s335_s17 = scalar_lea.vmem [#allocation12], %s1232_s18  ;;  %s1103_s11 = scalar_lea.hbm %s2125_s6, %s1480_s30 }
  0x3b   : > { %v1434_v5 = vld [vmem:[%s286_s26 + $0x10] sm:$0xff]  ;;  %v1433_v6 = vld [vmem:[%s286_s26 + $0x8] sm:$0xff]  ;;  %v1432_v7 = vld [vmem:[%s286_s26] sm:$0xff]  ;;  %s1105_s10 = sshll.u32 %s335_s17, 4  ;;  %s1107_s15 = sshll.u32 %s1103_s11, 4  ;;  %s1106_s10 = int_to_ptr.vmem [resolvable:$true] %s1105_s10  ;;  %s1108_s15 = int_to_ptr.hbm [resolvable:$true] %s1107_s15 }
  0x3c   : > { %v1440_v8 = vld [vmem:[#allocation6] sm:$0xff]  ;;  %v1441_v9 = vld [vmem:[#allocation6 + $0x8] sm:$0xff]  ;;  %v1442_v10 = vld [vmem:[#allocation6 + $0x10] sm:$0xff]  ;;  %s1092_s16 = scalar_lea.sflag [#allocation5], %s2012_s29  ;;  %s1783_s26 = sshra.s32 %s1108_s15, 4  ;;  %s1784_s26 = int_to_ptr.hbm [resolvable:$true] %s1783_s26 }
  0x3d   : > { %v1443_v11 = vld [vmem:[#allocation6 + $0x18] sm:$0xff]  ;;  %v1444_v12 = vld [vmem:[#allocation6 + $0x20] sm:$0xff]  ;;  %v1445_v15 = vld [vmem:[#allocation6 + $0x28] sm:$0xff]  ;;  %s1785_s27 = scalar_lea.hbm %s1784_s26, 16  ;;  %s1789_s12 = scalar_lea.hbm %s2125_s6, 32 }
  0x3e   : > { %465 = vmatpush.bf16.msra.mxu0 %v1438_v1  ;;  %v1455_v13 = vld [vmem:[#allocation9 + $0x38] sm:$0xff]  ;;  %v1454_v14 = vld [vmem:[#allocation9 + $0x30] sm:$0xff]  ;;  %v1453_v16 = vld [vmem:[#allocation9 + $0x28] sm:$0xff]  ;;  %p1786_p1 = scmp.ne.s32.totalorder %s1784_s26, %s1785_s27  ;;  %p1790_p11 = scmp.lt.s32.totalorder %s1784_s26, %s2125_s6 }
  0x3f   : > { %589 = vmatpush.bf16.msra.mxu1 %v1455_v13  ;;  %v1452_v17 = vld [vmem:[#allocation9 + $0x20] sm:$0xff]  ;;  %v1451_v18 = vld [vmem:[#allocation9 + $0x18] sm:$0xff]  ;;  %v1450_v19 = vld [vmem:[#allocation9 + $0x10] sm:$0xff]  ;;  %p1791_p2 = scmp.lt.s32.totalorder %s1789_s12, %s1785_s27 }
  0x40   : > { %v1446_v20 = vld [vmem:[#allocation6 + $0x30] sm:$0xff]  ;;  %v1448_v22 = vld [vmem:[#allocation9] sm:$0xff]  ;;  %v1447_v23 = vld [vmem:[#allocation6 + $0x38] sm:$0xff]  ;;  %p1787_p4 = pnand %p1786_p1, %p1979_p3 }
  0x41   : > { %v1449_v21 = vld [vmem:[#allocation9 + $0x8] sm:$0xff]  ;;  %v2031_v48 = vld [vmem:[%s2124_s5] ss:$0 sm:$0xff]  ;;  %p1792_p9 = por %p1791_p2, %p1790_p11 }
  0x42   : > { %466 = vmatpush.bf16.msra.mxu0 %v1437_v2  ;;  %p1788_p8 = pneg %p1787_p4 }
  0x43   : > { %590 = vmatpush.bf16.msra.mxu1 %v1454_v14 }
  0x44   : > { %p1793_p10 = pnand %p1792_p9, %p1788_p8 }
  0x46   : > { %467 = vmatpush.bf16.msra.mxu0 %v1436_v3 }
  0x47   : > { %591 = vmatpush.bf16.msra.mxu1 %v1453_v16 }
  0x4a   : > { %468 = vmatpush.bf16.msra.mxu0 %v1435_v4 }
  0x4b   : > { %592 = vmatpush.bf16.msra.mxu1 %v1452_v17 }
  0x4e   : > { %469 = vmatpush.bf16.msra.mxu0 %v1434_v5 }
  0x4f   : > { %593 = vmatpush.bf16.msra.mxu1 %v1451_v18 }
  0x52   : > { %470 = vmatpush.bf16.msra.mxu0 %v1433_v6 }
  0x53   : > { %594 = vmatpush.bf16.msra.mxu1 %v1450_v19 }
  0x56   : > { %471 = vmatpush.bf16.msra.mxu0 %v1432_v7 }
  0x57   : > { %595 = vmatpush.bf16.msra.mxu1 %v1449_v21 }
  0x59   : > { %472 = vmatmul.bf16.vlgmr.msra.gmra.mxu0 %v1440_v8 }
  0x5b   : > { %596 = vmatpush.bf16.msra.mxu1 %v1448_v22 }
  0x69   : > { %477 = vmatmul.bf16.gmra.mxu0 %v1441_v9 }
  0x79   : > { %482 = vmatmul.bf16.gmra.mxu0 %v1442_v10 }
  0x89   : > { %487 = vmatmul.bf16.gmra.mxu0 %v1443_v11 }
  0x99   : > { %492 = vmatmul.bf16.gmra.mxu0 %v1444_v12 }
  0xa9   : > { %497 = vmatmul.bf16.gmra.mxu0 %v1445_v15 }
  0xb9   : > { %502 = vmatmul.bf16.gmra.mxu0 %v1446_v20 }
  0xc9   : > { %507 = vmatmul.bf16.gmra.mxu0 %v1447_v23 }
  0xd6   : > { %v473_v24 = vpop.f32.mrf.mxu0 }
  0xde   : > { %v475_v25 = vpop.f32.mrf.mxu0 }
  0xdf   : > { %v529_v26 = vpack.c.bf16 %v475_v25, %v473_v24 }
  0xe1   : > { %597 = vmatmul.bf16.vlgmr.msra.gmra.mxu1 %v529_v26 }
  0xe6   : > { %v478_v27 = vpop.f32.mrf.mxu0 }
  0xee   : > { %v480_v28 = vpop.f32.mrf.mxu0 }
  0xef   : > { %v530_v29 = vpack.c.bf16 %v480_v28, %v478_v27 }
  0xf1   : > { %602 = vmatmul.bf16.gmra.mxu1 %v530_v29 }
  0xf6   : > { %v483_v30 = vpop.f32.mrf.mxu0 }
  0xfe   : > { %v485_v31 = vpop.f32.mrf.mxu0 }
  0xff   : > { %v531_v32 = vpack.c.bf16 %v485_v31, %v483_v30 }
 0x101   : > { %607 = vmatmul.bf16.gmra.mxu1 %v531_v32 }
 0x106   : > { %v488_v33 = vpop.f32.mrf.mxu0 }
 0x10e   : > { %v490_v34 = vpop.f32.mrf.mxu0 }
 0x10f   : > { %v532_v35 = vpack.c.bf16 %v490_v34, %v488_v33 }
 0x111   : > { %612 = vmatmul.bf16.gmra.mxu1 %v532_v35 }
 0x116   : > { %v493_v36 = vpop.f32.mrf.mxu0 }
 0x11e   : > { %v495_v37 = vpop.f32.mrf.mxu0 }
 0x11f   : > { %v533_v38 = vpack.c.bf16 %v495_v37, %v493_v36 }
 0x121   : > { %617 = vmatmul.bf16.gmra.mxu1 %v533_v38 }
 0x126   : > { %v498_v39 = vpop.f32.mrf.mxu0 }
 0x12e   : > { %v500_v40 = vpop.f32.mrf.mxu0 }
 0x12f   : > { %v534_v41 = vpack.c.bf16 %v500_v40, %v498_v39 }
 0x131   : > { %622 = vmatmul.bf16.gmra.mxu1 %v534_v41 }
 0x136   : > { %v503_v42 = vpop.f32.mrf.mxu0 }
 0x13e   : > { %v505_v43 = vpop.f32.mrf.mxu0 }
 0x13f   : > { %v535_v44 = vpack.c.bf16 %v505_v43, %v503_v42 }
 0x141   : > { %627 = vmatmul.bf16.gmra.mxu1 %v535_v44 }
 0x146   : > { %v508_v45 = vpop.f32.mrf.mxu0 }
 0x14e   : > { %v510_v46 = vpop.f32.mrf.mxu0 }
 0x14f   : > { %v536_v47 = vpack.c.bf16 %v510_v46, %v508_v45 }
 0x151   : > { %632 = vmatmul.bf16.gmra.mxu1 %v536_v47 }
 0x15e   : > { %v598_v49 = vpop.f32.mrf.mxu1 }
 0x15f   : > { %v599_v50 = vadd.f32 %v2031_v48, %v598_v49 }
 0x161   : > { %v638_v51 = vmax.f32 %v599_v50, 0.0 }
 0x163   : > { %v654_v54 = vpack.c.bf16 %v638_v51, %v638_v51 }
 0x165   : > { %v2035_v58 = vunpack.c.l.b16 %v654_v54 }
 0x166   : > { %v600_v52 = vpop.f32.mrf.mxu1 }
 0x167   : > { %v601_v53 = vadd.f32 %v2031_v48, %v600_v52 }
 0x169   : > { %v639_v55 = vmax.f32 %v601_v53, 0.0 }
 0x16b   : > { %v655_v56 = vpack.c.bf16 %v639_v55, %v639_v55  ;;  %v1484_v57 = vpack.c.bf16 %v639_v55, %v638_v51 }
 0x16d   : > { %1485 = vst [vmem:[#allocation2 + $0x30] sm:$0xff] %v1484_v57   ;;  %v2037_v59 = vunpack.c.l.b16 %v655_v56 }
 0x16e   : > { %v603_v60 = vpop.f32.mrf.mxu1 }
 0x16f   : > { %v703_v61 = vpack.c.b16 %v2037_v59, %v2035_v58  ;;  %v604_v62 = vadd.f32 %v2031_v48, %v603_v60  ;;  %v1477_v58 = vld [vmem:[#allocation11 + $0x28] sm:$0xff]  ;;  %v1476_v59 = vld [vmem:[#allocation11 + $0x20] sm:$0xff] }
 0x171   : > { %v640_v63 = vmax.f32 %v604_v62, 0.0 }
 0x173   : > { %v656_v2 = vpack.c.bf16 %v640_v63, %v640_v63 }
 0x175   : > { %v2043_v6 = vunpack.c.l.b16 %v656_v2 }
 0x176   : > { %v605_v0 = vpop.f32.mrf.mxu1 }
 0x177   : > { %v606_v1 = vadd.f32 %v2031_v48, %v605_v0 }
 0x179   : > { %v641_v3 = vmax.f32 %v606_v1, 0.0 }
 0x17b   : > { %v657_v4 = vpack.c.bf16 %v641_v3, %v641_v3  ;;  %v1489_v5 = vpack.c.bf16 %v641_v3, %v640_v63 }
 0x17d   : > { %1521 = vst [vmem:[#allocation2] sm:$0xff] %v1489_v5   ;;  %v2045_v7 = vunpack.c.l.b16 %v657_v4 }
 0x17e   : > { %v608_v8 = vpop.f32.mrf.mxu1 }
 0x17f   : > { %v704_v9 = vpack.c.b16 %v2045_v7, %v2043_v6  ;;  %v609_v10 = vadd.f32 %v2031_v48, %v608_v8  ;;  %v1479_v6 = vld [vmem:[#allocation11 + $0x38] sm:$0xff]  ;;  %v1469_v7 = vld [vmem:[#allocation6 + $0x28] sm:$0xff] }
 0x180   : > { %1003 = vmatpush.bf16.msra.mxu2 %v1479_v6 }
 0x181   : > { %v642_v11 = vmax.f32 %v609_v10, 0.0 }
 0x183   : > { %v658_v14 = vpack.c.bf16 %v642_v11, %v642_v11 }
 0x185   : > { %v2051_v18 = vunpack.c.l.b16 %v658_v14 }
 0x186   : > { %v610_v12 = vpop.f32.mrf.mxu1 }
 0x187   : > { %v611_v13 = vadd.f32 %v2031_v48, %v610_v12 }
 0x189   : > { %v643_v15 = vmax.f32 %v611_v13, 0.0 }
 0x18b   : > { %v659_v16 = vpack.c.bf16 %v643_v15, %v643_v15  ;;  %v1494_v17 = vpack.c.bf16 %v643_v15, %v642_v11 }
 0x18d   : > { %1522 = vst [vmem:[#allocation2 + $0x18] sm:$0xff] %v1494_v17   ;;  %v2053_v19 = vunpack.c.l.b16 %v659_v16 }
 0x18e   : > { %v613_v20 = vpop.f32.mrf.mxu1 }
 0x18f   : > { %v705_v21 = vpack.c.b16 %v2053_v19, %v2051_v18  ;;  %v614_v22 = vadd.f32 %v2031_v48, %v613_v20  ;;  %v1466_v18 = vld [vmem:[#allocation6 + $0x10] sm:$0xff]  ;;  %v1467_v19 = vld [vmem:[#allocation6 + $0x18] sm:$0xff] }
 0x191   : > { %v644_v23 = vmax.f32 %v614_v22, 0.0 }
 0x193   : > { %v660_v26 = vpack.c.bf16 %v644_v23, %v644_v23 }
 0x195   : > { %v2059_v30 = vunpack.c.l.b16 %v660_v26 }
 0x196   : > { %v615_v24 = vpop.f32.mrf.mxu1 }
 0x197   : > { %v616_v25 = vadd.f32 %v2031_v48, %v615_v24 }
 0x199   : > { %v645_v27 = vmax.f32 %v616_v25, 0.0 }
 0x19b   : > { %v661_v28 = vpack.c.bf16 %v645_v27, %v645_v27  ;;  %v1499_v29 = vpack.c.bf16 %v645_v27, %v644_v23 }
 0x19d   : > { %1523 = vst [vmem:[#allocation2 + $0x10] sm:$0xff] %v1499_v29   ;;  %v2061_v31 = vunpack.c.l.b16 %v661_v28 }
 0x19e   : > { %v618_v32 = vpop.f32.mrf.mxu1 }
 0x19f   : > { %v706_v33 = vpack.c.b16 %v2061_v31, %v2059_v30  ;;  %v619_v34 = vadd.f32 %v2031_v48, %v618_v32  ;;  %v1458_v31 = vld [vmem:[#allocation2 + $0x18] sm:$0xff]  ;;  %v1457_v32 = vld [vmem:[#allocation2] sm:$0xff] }
 0x1a1   : > { %v646_v37 = vmax.f32 %v619_v34, 0.0  ;;  %v1464_v34 = vld [vmem:[#allocation6] sm:$0xff] }
 0x1a4   : > { %v1459_v30 = vld [vmem:[#allocation2 + $0x10] sm:$0xff] }
 0x1a6   : > { %v620_v35 = vpop.f32.mrf.mxu1 }
 0x1a7   : > { %v621_v36 = vadd.f32 %v2031_v48, %v620_v35  ;;  %v1465_v35 = vld [vmem:[#allocation6 + $0x8] sm:$0xff] }
 0x1a9   : > { %v647_v38 = vmax.f32 %v621_v36, 0.0  ;;  %v1470_v36 = vld [vmem:[#allocation6 + $0x30] sm:$0xff] }
 0x1ab   : > { %v1504_v39 = vpack.c.bf16 %v647_v38, %v646_v37  ;;  %v663_v15 = vpack.c.bf16 %v647_v38, %v647_v38  ;;  %v1473_v38 = vld [vmem:[#allocation11 + $0x8] sm:$0xff] }
 0x1ad   : > { %1524 = vst [vmem:[#allocation2 + $0x8] sm:$0xff] %v1504_v39   ;;  %v696_v24 = vunpack.c.l.b16 %v663_v15  ;;  %v1472_v39 = vld [vmem:[#allocation11] sm:$0xff] }
 0x1ae   : > { %v623_v40 = vpop.f32.mrf.mxu1 }
 0x1af   : > { %v624_v41 = vadd.f32 %v2031_v48, %v623_v40  ;;  %v1471_v40 = vld [vmem:[#allocation6 + $0x38] sm:$0xff] }
 0x1b1   : > { %v648_v44 = vmax.f32 %v624_v41, 0.0 }
 0x1b3   : > { %v664_v13 = vpack.c.bf16 %v648_v44, %v648_v44 }
 0x1b4   : > { %v1460_v29 = vld [vmem:[#allocation2 + $0x8] sm:$0xff] }
 0x1b5   : > { %v697_v22 = vunpack.c.l.b16 %v664_v13 }
 0x1b6   : > { %v625_v42 = vpop.f32.mrf.mxu1 }
 0x1b7   : > { %v626_v43 = vadd.f32 %v2031_v48, %v625_v42 }
 0x1b9   : > { %v649_v45 = vmax.f32 %v626_v43, 0.0 }
 0x1bb   : > { %v1509_v46 = vpack.c.bf16 %v649_v45, %v648_v44  ;;  %v665_v10 = vpack.c.bf16 %v649_v45, %v649_v45 }
 0x1bd   : > { %1525 = vst [vmem:[#allocation2 + $0x20] sm:$0xff] %v1509_v46   ;;  %v698_v17 = vunpack.c.l.b16 %v665_v10 }
 0x1be   : > { %v628_v47 = vpop.f32.mrf.mxu1 }
 0x1bf   : > { %v629_v49 = vadd.f32 %v2031_v48, %v628_v47  ;;  %v708_v23 = vpack.c.b16 %v698_v17, %v697_v22 }
 0x1c1   : > { %v650_v52 = vmax.f32 %v629_v49, 0.0 }
 0x1c3   : > { %v666_v4 = vpack.c.bf16 %v650_v52, %v650_v52 }
 0x1c4   : > { %v1461_v28 = vld [vmem:[#allocation2 + $0x20] sm:$0xff] }
 0x1c5   : > { %v699_v14 = vunpack.c.l.b16 %v666_v4 }
 0x1c6   : > { %v630_v50 = vpop.f32.mrf.mxu1 }
 0x1c7   : > { %v631_v51 = vadd.f32 %v2031_v48, %v630_v50 }
 0x1c9   : > { %v651_v53 = vmax.f32 %v631_v51, 0.0 }
 0x1cb   : > { %v1514_v54 = vpack.c.bf16 %v651_v53, %v650_v52  ;;  %v667_v1 = vpack.c.bf16 %v651_v53, %v651_v53 }
 0x1cd   : > { %1526 = vst [vmem:[#allocation2 + $0x28] sm:$0xff] %v1514_v54   ;;  %v700_v12 = vunpack.c.l.b16 %v667_v1 }
 0x1ce   : > { %v633_v55 = vpop.f32.mrf.mxu1 }
 0x1cf   : > { %v634_v56 = vadd.f32 %v2031_v48, %v633_v55  ;;  %v709_v16 = vpack.c.b16 %v700_v12, %v699_v14 }
 0x1d1   : > { %v652_v57 = vmax.f32 %v634_v56, 0.0 }
 0x1d3   : > { %v668_v63 = vpack.c.bf16 %v652_v57, %v652_v57 }
 0x1d4   : > { %v1462_v25 = vld [vmem:[#allocation2 + $0x28] sm:$0xff] }
 0x1d5   : > { %v701_v5 = vunpack.c.l.b16 %v668_v63 }
 0x1d6   : > { %v635_v60 = vpop.f32.mrf.mxu1 }
 0x1d7   : > { %v636_v62 = vadd.f32 %v2031_v48, %v635_v60  ;;  %v662_v48 = vpack.c.bf16 %v646_v37, %v646_v37  ;;  %v1474_v37 = vld [vmem:[#allocation11 + $0x10] sm:$0xff] }
 0x1d9   : > { %v653_v0 = vmax.f32 %v636_v62, 0.0  ;;  %v695_v26 = vunpack.c.l.b16 %v662_v48 }
 0x1db   : > { %v669_v2 = vpack.c.bf16 %v653_v0, %v653_v0  ;;  %v1519_v3 = vpack.c.bf16 %v653_v0, %v652_v57  ;;  %v707_v27 = vpack.c.b16 %v696_v24, %v695_v26 }
 0x1dd   : > { %1527 = vst [vmem:[#allocation2 + $0x38] sm:$0xff] %v1519_v3   ;;  %v702_v8 = vunpack.c.l.b16 %v669_v2 }
 0x1df   : > { %v710_v11 = vpack.c.b16 %v702_v8, %v701_v5  ;;  %v1618_v8 = vld [vmem:[%s2124_s5 + $0x1] ss:$0 sm:$0xff] }
 0x1e1   : > { %719 = vmatpush.bf16.msrb.mxu1 %v710_v11 }
 0x1e4   : > { %v1463_v20 = vld [vmem:[#allocation2 + $0x38] sm:$0xff] }
 0x1e5   : > { %720 = vmatpush.bf16.msrb.mxu1 %v709_v16  ;;  %877 = vmatpush.bf16.msra.mxu3 %v1463_v20 }
 0x1e9   : > { %721 = vmatpush.bf16.msrb.mxu1 %v708_v23  ;;  %878 = vmatpush.bf16.msra.mxu3 %v1462_v25 }
 0x1ed   : > { %722 = vmatpush.bf16.msrb.mxu1 %v707_v27  ;;  %879 = vmatpush.bf16.msra.mxu3 %v1461_v28 }
 0x1f1   : > { %723 = vmatpush.bf16.msrb.mxu1 %v706_v33  ;;  %880 = vmatpush.bf16.msra.mxu3 %v1460_v29  ;;  %v1456_v33 = vld [vmem:[#allocation2 + $0x30] sm:$0xff] }
 0x1f5   : > { %724 = vmatpush.bf16.msrb.mxu1 %v705_v21  ;;  %881 = vmatpush.bf16.msra.mxu3 %v1459_v30  ;;  %v1468_v21 = vld [vmem:[#allocation6 + $0x20] sm:$0xff] }
 0x1f9   : > { %725 = vmatpush.bf16.msrb.mxu1 %v704_v9  ;;  %882 = vmatpush.bf16.msra.mxu3 %v1458_v31  ;;  %v1478_v9 = vld [vmem:[#allocation11 + $0x30] sm:$0xff] }
 0x1fa   : > { %1004 = vmatpush.bf16.msra.mxu2 %v1478_v9 }
 0x1fd   : > { %726 = vmatpush.bf16.msrb.mxu1 %v703_v61  ;;  %883 = vmatpush.bf16.msra.mxu3 %v1457_v32  ;;  %v1475_v61 = vld [vmem:[#allocation11 + $0x18] sm:$0xff] }
 0x1fe   : > { %1005 = vmatpush.bf16.msra.mxu2 %v1477_v58 }
 0x201   : > { %884 = vmatpush.bf16.msra.mxu3 %v1456_v33 }
 0x202   : > { %1006 = vmatpush.bf16.msra.mxu2 %v1476_v59 }
 0x204   : > { %885 = vmatmul.bf16.vlgmr.msra.gmra.mxu3 %v1464_v34 }
 0x206   : > { %1007 = vmatpush.bf16.msra.mxu2 %v1475_v61 }
 0x20a   : > { %1008 = vmatpush.bf16.msra.mxu2 %v1474_v37  ;;  %v670_v37 = vld [vmem:[#allocation8] sm:$0xf] }
 0x20b   : > { %727 = vmatmul.bf16.vlgmr.msrb.gmra.mxu1 %v670_v37 }
 0x20e   : > { %1009 = vmatpush.bf16.msra.mxu2 %v1473_v38 }
 0x212   : > { %1010 = vmatpush.bf16.msra.mxu2 %v1472_v39 }
 0x214   : > { %890 = vmatmul.bf16.gmra.mxu3 %v1465_v35 }
 0x224   : > { %895 = vmatmul.bf16.gmra.mxu3 %v1466_v18 }
 0x234   : > { %900 = vmatmul.bf16.gmra.mxu3 %v1467_v19 }
 0x244   : > { %905 = vmatmul.bf16.gmra.mxu3 %v1468_v21 }
 0x254   : > { %910 = vmatmul.bf16.gmra.mxu3 %v1469_v7 }
 0x264   : > { %915 = vmatmul.bf16.gmra.mxu3 %v1470_v36 }
 0x274   : > { %920 = vmatmul.bf16.gmra.mxu3 %v1471_v40 }
 0x287   : > { %v886_v41 = vpop.f32.mrf.mxu3 }
 0x28f   : > { %v888_v42 = vpop.f32.mrf.mxu3 }
 0x290   : > { %v942_v43 = vpack.c.bf16 %v888_v42, %v886_v41 }
 0x292   : > { %1011 = vmatmul.bf16.vlgmr.msra.gmra.mxu2 %v942_v43 }
 0x297   : > { %v891_v44 = vpop.f32.mrf.mxu3 }
 0x29f   : > { %v893_v45 = vpop.f32.mrf.mxu3 }
 0x2a0   : > { %v943_v46 = vpack.c.bf16 %v893_v45, %v891_v44 }
 0x2a2   : > { %1016 = vmatmul.bf16.gmra.mxu2 %v943_v46 }
 0x2a7   : > { %v896_v47 = vpop.f32.mrf.mxu3 }
 0x2af   : > { %v898_v49 = vpop.f32.mrf.mxu3 }
 0x2b0   : > { %v944_v50 = vpack.c.bf16 %v898_v49, %v896_v47 }
 0x2b2   : > { %1021 = vmatmul.bf16.gmra.mxu2 %v944_v50 }
 0x2b7   : > { %v901_v51 = vpop.f32.mrf.mxu3 }
 0x2bf   : > { %v903_v52 = vpop.f32.mrf.mxu3 }
 0x2c0   : > { %v945_v53 = vpack.c.bf16 %v903_v52, %v901_v51 }
 0x2c2   : > { %1026 = vmatmul.bf16.gmra.mxu2 %v945_v53 }
 0x2c7   : > { %v906_v54 = vpop.f32.mrf.mxu3 }
 0x2cf   : > { %v908_v55 = vpop.f32.mrf.mxu3 }
 0x2d0   : > { %v946_v56 = vpack.c.bf16 %v908_v55, %v906_v54 }
 0x2d2   : > { %1031 = vmatmul.bf16.gmra.mxu2 %v946_v56 }
 0x2d7   : > { %v911_v57 = vpop.f32.mrf.mxu3 }
 0x2df   : > { %v913_v60 = vpop.f32.mrf.mxu3 }
 0x2e0   : > { %v947_v62 = vpack.c.bf16 %v913_v60, %v911_v57 }
 0x2e2   : > { %1036 = vmatmul.bf16.gmra.mxu2 %v947_v62 }
 0x2e7   : > { %v916_v63 = vpop.f32.mrf.mxu3 }
 0x2ef   : > { %v918_v0 = vpop.f32.mrf.mxu3 }
 0x2f0   : > { %v948_v1 = vpack.c.bf16 %v918_v0, %v916_v63  ;;  %v1076_v63 = vld [vmem:[#allocation8] sm:$0xf]  ;;  %v728_v0 = vpop.f32.mrf.mxu1 }
 0x2f1   : > { %732 = vst [vmem:[%s335_s17] sm:$0xff] %v728_v0 }
 0x2f2   : > { %1041 = vmatmul.bf16.gmra.mxu2 %v948_v1 }
 0x2f7   : > { %v921_v2 = vpop.f32.mrf.mxu3 }
 0x2f8   : > { %v730_v1 = vpop.f32.mrf.mxu1 }
 0x2ff   : > { %v923_v3 = vpop.f32.mrf.mxu3 }
 0x300   : > { %v949_v4 = vpack.c.bf16 %v923_v3, %v921_v2 }
 0x302   : > { %1046 = vmatmul.bf16.gmra.mxu2 %v949_v4 }
 0x315   : > { %v1012_v5 = vpop.f32.mrf.mxu2 }
 0x316   : > { %v1013_v10 = vadd.f32 %v1618_v8, %v1012_v5 }
 0x318   : > { %v1052_v13 = vmax.f32 %v1013_v10, 0.0 }
 0x31d   : > { %v1014_v11 = vpop.f32.mrf.mxu2 }
 0x31e   : > { %v1015_v12 = vadd.f32 %v1618_v8, %v1014_v11 }
 0x320   : > { %v1053_v14 = vmax.f32 %v1015_v12, 0.0 }
 0x322   : > { %v1068_v15 = vpack.c.bf16 %v1053_v14, %v1052_v13 }
 0x325   : > { %v1017_v16 = vpop.f32.mrf.mxu2 }
 0x326   : > { %v1018_v17 = vadd.f32 %v1618_v8, %v1017_v16 }
 0x328   : > { %v1054_v22 = vmax.f32 %v1018_v17, 0.0 }
 0x32d   : > { %v1019_v20 = vpop.f32.mrf.mxu2 }
 0x32e   : > { %v1020_v48 = vadd.f32 %v1618_v8, %v1019_v20 }
 0x330   : > { %v1055_v23 = vmax.f32 %v1020_v48, 0.0 }
 0x332   : > { %v1069_v24 = vpack.c.bf16 %v1055_v23, %v1054_v22 }
 0x335   : > { %v1022_v25 = vpop.f32.mrf.mxu2 }
 0x336   : > { %v1023_v26 = vadd.f32 %v1618_v8, %v1022_v25 }
 0x338   : > { %v1056_v29 = vmax.f32 %v1023_v26, 0.0 }
 0x33d   : > { %v1024_v27 = vpop.f32.mrf.mxu2 }
 0x33e   : > { %v1025_v28 = vadd.f32 %v1618_v8, %v1024_v27 }
 0x340   : > { %v1057_v30 = vmax.f32 %v1025_v28, 0.0 }
 0x342   : > { %v1070_v31 = vpack.c.bf16 %v1057_v30, %v1056_v29 }
 0x345   : > { %v1027_v32 = vpop.f32.mrf.mxu2 }
 0x346   : > { %v1028_v33 = vadd.f32 %v1618_v8, %v1027_v32 }
 0x348   : > { %v1058_v18 = vmax.f32 %v1028_v33, 0.0 }
 0x34d   : > { %v1029_v34 = vpop.f32.mrf.mxu2 }
 0x34e   : > { %v1030_v35 = vadd.f32 %v1618_v8, %v1029_v34 }
 0x350   : > { %v1059_v19 = vmax.f32 %v1030_v35, 0.0 }
 0x352   : > { %v1071_v21 = vpack.c.bf16 %v1059_v19, %v1058_v18 }
 0x355   : > { %v1032_v6 = vpop.f32.mrf.mxu2 }
 0x356   : > { %v1033_v54 = vadd.f32 %v1618_v8, %v1032_v6 }
 0x358   : > { %v1060_v60 = vmax.f32 %v1033_v54, 0.0 }
 0x35d   : > { %v1034_v7 = vpop.f32.mrf.mxu2 }
 0x35e   : > { %v1035_v51 = vadd.f32 %v1618_v8, %v1034_v7 }
 0x360   : > { %v1061_v56 = vmax.f32 %v1035_v51, 0.0 }
 0x362   : > { %v1072_v62 = vpack.c.bf16 %v1061_v56, %v1060_v60 }
 0x365   : > { %v1037_v9 = vpop.f32.mrf.mxu2 }
 0x366   : > { %v1038_v49 = vadd.f32 %v1618_v8, %v1037_v9 }
 0x368   : > { %v1062_v55 = vmax.f32 %v1038_v49, 0.0 }
 0x36d   : > { %v1039_v58 = vpop.f32.mrf.mxu2 }
 0x36e   : > { %v1040_v45 = vadd.f32 %v1618_v8, %v1039_v58 }
 0x370   : > { %v1063_v52 = vmax.f32 %v1040_v45, 0.0 }
 0x372   : > { %v1073_v57 = vpack.c.bf16 %v1063_v52, %v1062_v55 }
 0x375   : > { %v1042_v59 = vpop.f32.mrf.mxu2 }
 0x376   : > { %v1043_v42 = vadd.f32 %v1618_v8, %v1042_v59 }
 0x378   : > { %v1064_v50 = vmax.f32 %v1043_v42, 0.0 }
 0x37d   : > { %v1044_v61 = vpop.f32.mrf.mxu2 }
 0x37e   : > { %v1045_v40 = vadd.f32 %v1618_v8, %v1044_v61 }
 0x380   : > { %v1065_v46 = vmax.f32 %v1045_v40, 0.0 }
 0x382   : > { %v1074_v53 = vpack.c.bf16 %v1065_v46, %v1064_v50 }
 0x385   : > { %v1047_v36 = vpop.f32.mrf.mxu2 }
 0x386   : > { %v1048_v38 = vadd.f32 %v1618_v8, %v1047_v36 }
 0x388   : > { %v1066_v43 = vmax.f32 %v1048_v38, 0.0 }
 0x38d   : > { %v1049_v39 = vpop.f32.mrf.mxu2 }
 0x38e   : > { %v1050_v41 = vadd.f32 %v1618_v8, %v1049_v39 }
 0x390   : > { %v1067_v44 = vmax.f32 %v1050_v41, 0.0 }
 0x392   : > { %v1075_v47 = vpack.c.bf16 %v1067_v44, %v1066_v43 }
 0x394   : > { %1077 = vmatpush.bf16.msrb.mxu0 %v1075_v47 }
 0x398   : > { %1078 = vmatpush.bf16.msrb.mxu0 %v1074_v53 }
 0x39c   : > { %1079 = vmatpush.bf16.msrb.mxu0 %v1073_v57 }
 0x3a0   : > { %1080 = vmatpush.bf16.msrb.mxu0 %v1072_v62 }
 0x3a4   : > { %1081 = vmatpush.bf16.msrb.mxu0 %v1071_v21 }
 0x3a8   : > { %1082 = vmatpush.bf16.msrb.mxu0 %v1070_v31 }
 0x3ac   : > { %1083 = vmatpush.bf16.msrb.mxu0 %v1069_v24 }
 0x3b0   : > { %1084 = vmatpush.bf16.msrb.mxu0 %v1068_v15 }
 0x3b3   : > { %1085 = vmatmul.bf16.vlgmr.msrb.gmra.mxu0 %v1076_v63 }
 0x430   : > { %v1086_v2 = vpop.f32.mrf.mxu0 }
 0x431   : > { %1090 = vst [vmem:[%s335_s17 + $0x8] sm:$0xff] %v1086_v2 }
 0x432   : > { %1796 = shalt.err (!%p1793_p10)
}
 0x433   : > { %1546 = dma.vmem_to_hbm [thread:$0]  (%p1979_p3), %s1106_s10, 256, %s1108_s15, %s1092_s16  }
 0x438   : > { %v1088_v3 = vpop.f32.mrf.mxu0 }
 0x439 PF: > { %s1119_s29 = sand.u32 1, %s1831_s21   ;;  %p2136_p12 = scmp.ge.s32.totalorder %s1843_s24, 2 }
 0x43a   : > { %s1120_s17 = scalar_lea.sflag [#allocation5], %s1119_s29 }
 0x43b   : > { %p1566_p13 = pnand %p2136_p12, %p1921_p6 }
 0x43d   : > { %p1567_p0 = pneg %p1566_p13 }
 0x43f   : > { %1826 = dma.done.wait (%p1567_p0), %s1120_s17, 256  }
 0x440   : > { %1828 = vsyncadd (%p1567_p0), %s1120_s17, 4294967040  ;;  %p21_p5 = scmp.ge.s32.totalorder %s1969_s14, 4   ;;  %s2137_s21 = smov %s1835_s22 }
 0x441   : > { %s2138_s22 = smov %s1839_s23  ;;  %s2139_s23 = smov %s1985_s20 }
 0x442   : > { %s2140_s24 = smov %s1969_s14  ;;  %23 = sbr.rel (!%p21_p5) target bundleno = 7 (0x7), region = 106 }
 0x447   :  { %1126 = vsyncpa [#allocation4], 1 }
 0x448   :  { %1128 = vsyncpa [#allocation4 + $0x1], 1 }
 0x449   :  { %1129 = vsyncpa [#allocation7], 1 }
 0x44a   :  { %1130 = vsyncpa [#allocation10], 1 }
 0x44b   :  { %1131 = vsyncpa [#allocation5], 1 }
 0x44c   :  { %1133 = vsyncpa [#allocation5 + $0x1], 1 }

</bundles_post_ra>
